<compile_context>
chip_gen: v5e
topology: v5e:2x2
jax: 0.10.0
libtpu: 0.0.40
codegen_flags: <defaults>
</compile_context>

<pallas_src>
import functools

import jax
import jax.numpy as jnp
import numpy as np
from jax.experimental import pallas as pl
from jax.experimental.pallas import tpu as pltpu


def _round_up(x, m):
    return ((x + m - 1) // m) * m


def _cdiv(a, b):
    return (a + b - 1) // b


def _is_half(dt):
    dt = np.dtype(dt)
    return dt == np.dtype(jnp.bfloat16) or dt == np.dtype(jnp.float16)


def _vmem_capacity_bytes():
    # Trace-time hardware query; fall back to the most conservative value
    # (v7x: 64 MiB per TensorCore).  Clamp the reported figure so an
    # over-reporting query can never over-size tiles.
    try:
        cap = int(pltpu.get_tpu_info().vmem_capacity_bytes)
    except Exception:
        cap = 64 << 20
    return min(max(cap, 16 << 20), 128 << 20)


def _rmsnorm_kernel(eps, inv_h, cast_to_weight_dtype, x_ref, w_ref, o_ref):
    # x_ref: (TR, H), w_ref: (1, H), o_ref: (TR, H)
    xf = x_ref[...].astype(jnp.float32)
    # variance = mean(x^2) over the true hidden size (block last dim == H, so
    # the reduction is exact; no lane masking needed).
    ssq = jnp.sum(xf * xf, axis=-1, keepdims=True)
    scale = jax.lax.rsqrt(ssq * jnp.float32(inv_h) + jnp.float32(eps))
    y = xf * scale
    w = w_ref[...]
    if cast_to_weight_dtype:
        # torch: if weight is fp16/bf16, cast the activation to weight dtype
        # before the weight multiply.
        y = y.astype(w.dtype)
    o_ref[...] = (w * y).astype(o_ref.dtype)


def _choose_row_tile(rows, H, x_it, o_it, vmem_budget):
    # Sublane alignment: 8 rows for 4-byte dtypes, 16 for 2-byte dtypes.
    align = 16 if min(x_it, o_it) < 4 else 8
    # Per-row VMEM footprint: double-buffered input + double-buffered output
    # + ~2 full-tile f32 temporaries materialized by the kernel body.
    per_row = 2 * H * x_it + 2 * H * o_it + 2 * H * 4
    max_by_vmem = max(align, (vmem_budget // max(1, per_row)) // align * align)
    # Target ~12 MiB of combined in+out HBM traffic per grid step.
    target = max(align, ((12 << 20) // max(1, H * (x_it + o_it))) // align * align)
    tile = min(max_by_vmem, target)

    if tile >= rows:
        # Whole problem fits a single block: split into several grid steps
        # (>= 2-4 per TensorCore on v7x) so DMA prefetch / writeback still
        # pipeline within a core and the parallel row axis shards across the
        # cores, while keeping each block >= ~1 MiB of input.
        min_rows = max(align, _round_up(_cdiv(1 << 20, max(1, H * x_it)), align))
        steps = max(1, min(8, rows // min_rows))
        tile = _round_up(_cdiv(rows, steps), align)

    # If tile == rows the block is full-extent (exempt from the 8-row rule);
    # otherwise tile is a multiple of `align`.
    return max(1, min(tile, rows))


def rms_norm(x, weight, eps=1e-5):
    """RMSNorm matching torch `manual_rms_norm` semantics.

    x: array of shape (..., *normalized_shape); weight: normalized_shape.
    """
    normalized_shape = weight.shape
    nd = len(normalized_shape)
    assert x.shape[-nd:] == normalized_shape, (x.shape, normalized_shape)
    H = int(np.prod(normalized_shape))
    lead_shape = x.shape[:-nd]
    rows = int(np.prod(lead_shape)) if lead_shape else 1

    weight_is_half = _is_half(weight.dtype)
    # torch promotion: half weight -> half out; otherwise f32 (variance path).
    out_dtype = weight.dtype if weight_is_half else jnp.float32

    # Row-major dim merges are layout-preserving (no HBM copy).
    x2d = x.reshape(rows, H)
    w2d = weight.reshape(1, H)

    vmem_cap = _vmem_capacity_bytes()
    x_it = np.dtype(x2d.dtype).itemsize
    o_it = np.dtype(out_dtype).itemsize
    w_it = np.dtype(w2d.dtype).itemsize

    # Conservative working-set budget: safe on v7x (64 MiB/TC) even if the
    # capacity query were to report a per-chip number.
    vmem_budget = min(int(vmem_cap * 0.35), 28 << 20)
    tile = _choose_row_tile(rows, H, x_it, o_it, vmem_budget)

    grid = (pl.cdiv(rows, tile),)

    # Scoped-VMEM limit covering double-buffered I/O, ~3 f32-sized temporaries
    # and the (tiny) weight block, plus headroom.
    needed = tile * (2 * H * x_it + 2 * H * o_it + 3 * H * 4) + 2 * H * w_it
    vmem_limit = int(min(vmem_cap, max(needed + (16 << 20), 32 << 20)))

    kernel = functools.partial(
        _rmsnorm_kernel, float(eps), 1.0 / float(H), bool(weight_is_half))

    out = pl.pallas_call(
        kernel,
        out_shape=jax.ShapeDtypeStruct((rows, H), out_dtype),
        grid_spec=pltpu.PrefetchScalarGridSpec(
            num_scalar_prefetch=0,
            grid=grid,
            in_specs=[
                pl.BlockSpec((tile, H), lambda i: (i, 0)),
                # weight is grid-invariant; tiny, default buffering is fine.
                pl.BlockSpec((1, H), lambda i: (0, 0)),
            ],
            out_specs=pl.BlockSpec((tile, H), lambda i: (i, 0)),
        ),
        compiler_params=pltpu.CompilerParams(
            dimension_semantics=("parallel",),
            vmem_limit_bytes=vmem_limit,
        ),
    )(x2d, w2d)

    return out.reshape(lead_shape + normalized_shape)


def _ref_rms_norm(x, weight, eps=1e-5):
    nd = len(weight.shape)
    dims = tuple(range(-nd, 0))
    xf = x.astype(jnp.float32)
    var = jnp.mean(xf * xf, axis=dims, keepdims=True)
    y = xf * jax.lax.rsqrt(var + jnp.float32(eps))
    if _is_half(weight.dtype):
        y = y.astype(weight.dtype)
    return weight * y


if __name__ == "__main__":
    key = jax.random.PRNGKey(0)
    k1, k2, k3, k4 = jax.random.split(key, 4)
    eps = 1e-5

    # Case 1: module default — f32 activations, weight initialized to ones.
    batch, seq, hidden = 2, 8, 128
    x = jax.random.normal(k1, (batch, seq, hidden), dtype=jnp.float32)
    w = jnp.ones((hidden,), dtype=jnp.float32)
    out = jax.block_until_ready(rms_norm(x, w, eps))
    ref = _ref_rms_norm(x, w, eps)
    assert out.shape == x.shape and out.dtype == ref.dtype
    np.testing.assert_allclose(np.asarray(out), np.asarray(ref), rtol=1e-5, atol=1e-5)

    # Case 2: bf16 activations / bf16 weight (bf16 I/O path, out dtype = bf16).
    xb = jax.random.normal(k2, (batch, seq, hidden), dtype=jnp.float32).astype(jnp.bfloat16)
    wb = (1.0 + 0.1 * jax.random.normal(k3, (hidden,), dtype=jnp.float32)).astype(jnp.bfloat16)
    outb = jax.block_until_ready(rms_norm(xb, wb, eps))
    refb = _ref_rms_norm(xb, wb, eps)
    assert outb.dtype == jnp.bfloat16 and outb.shape == xb.shape
    np.testing.assert_allclose(np.asarray(outb).astype(np.float32),
                               np.asarray(refb).astype(np.float32),
                               rtol=2e-2, atol=2e-2)

    # Case 3: hidden not a multiple of 128 (ragged-lane path, no host padding).
    x3 = jax.random.normal(k1, (3, 5, 96), dtype=jnp.float32)
    w3 = jnp.ones((96,), dtype=jnp.float32)
    out3 = jax.block_until_ready(rms_norm(x3, w3, eps))
    ref3 = _ref_rms_norm(x3, w3, eps)
    assert out3.shape == x3.shape
    np.testing.assert_allclose(np.asarray(out3), np.asarray(ref3), rtol=1e-5, atol=1e-5)

    # Case 4: rows not a multiple of the row tile (exercises the ragged last
    # grid block with masked output writeback, no host pad/slice).
    x4 = jax.random.normal(k4, (41, 50, 256), dtype=jnp.float32)
    w4 = (1.0 + 0.05 * jax.random.normal(k3, (256,), dtype=jnp.float32))
    out4 = jax.block_until_ready(rms_norm(x4, w4, eps))
    ref4 = _ref_rms_norm(x4, w4, eps)
    assert out4.shape == x4.shape
    np.testing.assert_allclose(np.asarray(out4), np.asarray(ref4), rtol=1e-4, atol=1e-5)

    print("KERNEL_OK")
</pallas_src>

<mosaic_0001>
module attributes {stable_mosaic.version = 11 : i64} {
  func.func @_rmsnorm_kernel(%arg0: i32, %arg1: memref<16x128xf32, #tpu.memory_space<vmem>>, %arg2: memref<1x128xf32, #tpu.memory_space<vmem>>, %arg3: memref<16x128xf32, #tpu.memory_space<vmem>>) attributes {dimension_semantics = [#tpu.dimension_semantics<parallel>], iteration_bounds = array<i64: 1>, scalar_prefetch = 0 : i64, scratch_operands = 0 : i64, tpu.core_type = #tpu.core_type<tc>, window_params = [{transform_indices = @transform_0, window_bounds = array<i64: 16, 128>}, {pipeline_mode = #tpu.pipeline_mode<synchronous>, transform_indices = @transform_1, window_bounds = array<i64: 1, 128>}, {transform_indices = @transform_2, window_bounds = array<i64: 16, 128>}]} {
    %c0 = arith.constant 0 : index
    %c0_0 = arith.constant 0 : index
    %0 = vector.load %arg1[%c0, %c0_0] : memref<16x128xf32, #tpu.memory_space<vmem>>, vector<16x128xf32>
    %1 = arith.mulf %0, %0 : vector<16x128xf32>
    %cst = arith.constant dense<0.000000e+00> : vector<16xf32>
    %2 = vector.multi_reduction <add>, %1, %cst [1] : vector<16x128xf32> to vector<16xf32>
    %3 = vector.shape_cast %2 : vector<16xf32> to vector<16x1xf32>
    %cst_1 = arith.constant 7.812500e-03 : f32
    %4 = vector.broadcast %cst_1 : f32 to vector<16x1xf32>
    %5 = arith.mulf %3, %4 : vector<16x1xf32>
    %cst_2 = arith.constant 9.99999974E-6 : f32
    %6 = vector.broadcast %cst_2 : f32 to vector<16x1xf32>
    %7 = arith.addf %5, %6 : vector<16x1xf32>
    %8 = math.rsqrt %7 : vector<16x1xf32>
    %9 = vector.broadcast %8 : vector<16x1xf32> to vector<16x128xf32>
    %10 = arith.mulf %0, %9 : vector<16x128xf32>
    %c0_3 = arith.constant 0 : index
    %c0_4 = arith.constant 0 : index
    %11 = vector.load %arg2[%c0_3, %c0_4] : memref<1x128xf32, #tpu.memory_space<vmem>>, vector<1x128xf32>
    %12 = vector.broadcast %11 : vector<1x128xf32> to vector<16x128xf32>
    %13 = arith.mulf %12, %10 : vector<16x128xf32>
    %c0_5 = arith.constant 0 : index
    %c0_6 = arith.constant 0 : index
    %14 = vector.load %arg3[%c0_5, %c0_6] : memref<16x128xf32, #tpu.memory_space<vmem>>, vector<16x128xf32>
    tpu.vector_store %arg3[%c0_5, %c0_6], %13 {strides = array<i32>} : memref<16x128xf32, #tpu.memory_space<vmem>>, vector<16x128xf32>,
    return
  }
  func.func @transform_0(%arg0: i32) -> (i32, i32) {
    %c0_i32 = arith.constant 0 : i32
    %c0_i32_0 = arith.constant 0 : i32
    return %arg0, %c0_i32 : i32, i32
  }
  func.func @transform_1(%arg0: i32) -> (i32, i32) {
    %c0_i32 = arith.constant 0 : i32
    %c0_i32_0 = arith.constant 0 : i32
    %c0_i32_1 = arith.constant 0 : i32
    return %c0_i32, %c0_i32_0 : i32, i32
  }
  func.func @transform_2(%arg0: i32) -> (i32, i32) {
    %c0_i32 = arith.constant 0 : i32
    %c0_i32_0 = arith.constant 0 : i32
    return %arg0, %c0_i32 : i32, i32
  }
}

</mosaic_0001>

<bundles_post_ra>
// kernel: tpu_custom_call.1
= control target key start
LH: loop header
LB: loop body
LE: loop exit
PB: predicated region body
PF: predicated region fallthrough
CT: control target
= control target key end

     0   :  { %7 = vsyncpa [#allocation3], 0  ;;  %s227_s0 = inlined_call_operand.hbm [shape: f32[16,128], index: 0, kind: input, shape index: {}]   ;;  %s228_s1 = inlined_call_operand.hbm [shape: f32[1,128], index: 1, kind: input, shape index: {}]   ;;  %s229_s2 = inlined_call_operand.hbm [shape: f32[16,128], index: 2, kind: output, shape index: {}]  }
   0x1   :  { %8 = vsyncpa [#allocation6], 0 }
   0x2   :  { %9 = vsyncpa [#allocation4], 0  ;;  %s14_s11 = sshll.u32 %s227_s0, 4  ;;  %s192_s12 = smov [#allocation2]   ;;  %s15_s11 = int_to_ptr.hbm [resolvable:$true] %s14_s11 }
   0x3   :  { %s16_s13 = sshll.u32 %s192_s12, 4  ;;  %s28_s16 = sshll.u32 %s228_s1, 4  ;;  %s17_s13 = int_to_ptr.vmem [resolvable:$true] %s16_s13  ;;  %s29_s16 = int_to_ptr.hbm [resolvable:$true] %s28_s16 }
   0x4   :  { %s193_s17 = smov 128   ;;  %s194_s18 = smov 8  }
   0x5   :  { %22 = dma.hbm_to_vmem [thread:$0]  %s15_s11, 256, %s17_s13, [#allocation3], %s193_s17, %s193_s17, %s194_s18  }
   0x6   :  { %s195_s19 = smov [#allocation5]  }
   0x7   :  { %s30_s20 = sshll.u32 %s195_s19, 4  ;;  %s31_s20 = int_to_ptr.vmem [resolvable:$true] %s30_s20 }
   0x8   :  { %33 = dma.hbm_to_vmem [thread:$0]  %s29_s16, 16, %s31_s20, [#allocation6]  }
   0x9   :  { %186 = dma.done.wait [#allocation3], 256  }
   0xa   :  { %187 = vsyncadd [#allocation3], 4294967040 }
   0xb   :  { %188 = dma.done.wait [#allocation6], 16  }
   0xc   :  { %189 = vsyncadd [#allocation6], 4294967280  ;;  %v42_v0 = vld [vmem:[#allocation2] sm:$0xff]  ;;  %v43_v2 = vld [vmem:[#allocation2 + $0x8] sm:$0xff]  ;;  %s196_s0 = smov [#allocation7]   ;;  %s90_s23 = sshll.u32 %s229_s2, 4  ;;  %s91_s23 = int_to_ptr.hbm [resolvable:$true] %s90_s23 }
   0xd   :  { %v44_v1 = vmul.f32 %v42_v0, %v42_v0  ;;  %v45_v3 = vmul.f32 %v43_v2, %v43_v2  ;;  %v109_v18 = vld [vmem:[#allocation5] ss:$0 sm:$0xff]  ;;  %s88_s1 = sshll.u32 %s196_s0, 4  ;;  %s89_s1 = int_to_ptr.vmem [resolvable:$true] %s88_s1 }
   0xf   :  { %46 = vadd.xlane.f32.xlu0 %v44_v1 }
  0x17   :  { %48 = vadd.xlane.f32.xlu0 %v45_v3 }
  0x82   :  { %v47_v4 = vpop.xlane.xlu0 %46 }
  0x83   :  { %v50_v5 = vmul.f32 0.0078125, %v47_v4 }
  0x85   :  { %v52_v6 = vadd.f32 1e-05, %v50_v5 }
  0x87   :  { %110 = vrsqrt.f32 %v52_v6  ;;  %vm60_vm1 = vweird.f32 %v52_v6 }
  0x8a   :  { %v49_v7 = vpop.xlane.xlu0 %48 }
  0x8b   :  { %v51_v8 = vmul.f32 0.0078125, %v49_v7 }
  0x8d   :  { %v111_v9 = vpop.eup %110  ;;  %v53_v10 = vadd.f32 1e-05, %v51_v8 }
  0x8e   :  { %v55_v11 = vmul.f32 %v111_v9, %v52_v6  ;;  %vm61_vm0 = vweird.f32 %v111_v9 }
  0x8f   :  { %112 = vrsqrt.f32 %v53_v10  ;;  %vm62_vm2 = vmor %vm60_vm1, %vm61_vm0  ;;  %vm70_vm4 = vweird.f32 %v53_v10 }
  0x90   :  { %v56_v12 = vmul.f32 %v111_v9, %v55_v11 }
  0x92   :  { %v57_v13 = vmul.f32 0.5, %v56_v12 }
  0x94   :  { %v58_v14 = vsub.f32 1.5, %v57_v13 }
  0x95   :  { %v113_v15 = vpop.eup %112 }
  0x96   :  { %v59_v16 = vmul.f32 %v111_v9, %v58_v14  ;;  %v65_v17 = vmul.f32 %v113_v15, %v53_v10  ;;  %vm71_vm3 = vweird.f32 %v113_v15 }
  0x97   :  { %vm72_vm5 = vmor %vm70_vm4, %vm71_vm3 }
  0x98   :  { %v63_v19 = vsel %vm62_vm2, %v111_v9, %v59_v16  ;;  %v66_v20 = vmul.f32 %v113_v15, %v65_v17 }
  0x99   :  { %v74_v21 = vmul.f32 %v63_v19, %v42_v0 }
  0x9a   :  { %v67_v22 = vmul.f32 0.5, %v66_v20 }
  0x9b   :  { %v80_v23 = vmul.f32 %v109_v18, %v74_v21 }
  0x9c   :  { %v68_v24 = vsub.f32 1.5, %v67_v22 }
  0x9d   :  { %82 = vst [vmem:[#allocation7] sm:$0xff] %v80_v23 }
  0x9e   :  { %v69_v25 = vmul.f32 %v113_v15, %v68_v24 }
  0xa0   :  { %v73_v26 = vsel %vm72_vm5, %v113_v15, %v69_v25 }
  0xa1   :  { %v75_v27 = vmul.f32 %v73_v26, %v43_v2 }
  0xa3   :  { %v81_v28 = vmul.f32 %v109_v18, %v75_v27 }
  0xa5   :  { %83 = vst [vmem:[#allocation7 + $0x8] sm:$0xff] %v81_v28 }
  0xa6   :  { %96 = dma.vmem_to_hbm [thread:$0]  %s89_s1, 256, %s91_s23, [#allocation4], %s193_s17, %s193_s17, %s194_s18  }
  0xa7   :  { %190 = dma.done.wait [#allocation4], 256  }
  0xa8   :  { %191 = vsyncadd [#allocation4], 4294967040 }
  0xa9   :  { %101 = vsyncpa [#allocation3], 1 }
  0xaa   :  { %102 = vsyncpa [#allocation6], 1 }
  0xab   :  { %103 = vsyncpa [#allocation4], 1 }

</bundles_post_ra>
